<compile_context>
chip_gen: v7x
topology: tpu7x:2x2x1
jax: 0.10.0
libtpu: 0.0.40
codegen_flags: <defaults>
</compile_context>

<pallas_src>
import jax
import jax.numpy as jnp
from jax.experimental import pallas as pl
from jax.experimental.pallas import tpu as pltpu

LANE = 128


def _round_up(n, m):
    return ((n + m - 1) // m) * m


def _cdiv(a, b):
    return -(-a // b)


def _make_ffn_kernel(num_hidden_layers, p_pad, scale_pad, min_scale=1e-5):
    n_in = 1 + 2 * num_hidden_layers + 2  # ctx, (W,b)*hidden, fused (W,b)

    def kernel(*refs):
        ctx_ref = refs[0]
        w_refs = refs[1:n_in]
        out_ref = refs[n_in]

        # ---- mean-abs scaling (f32) ----
        x = ctx_ref[...]                                           # (TB, C)
        scale = jnp.maximum(jnp.mean(jnp.abs(x), axis=1, keepdims=True),
                            min_scale)                             # (TB, 1)
        inv_scale = pl.reciprocal(scale, approx=True)              # EUP slot
        h = (x * inv_scale).astype(jnp.bfloat16)

        # ---- hidden Linear + ReLU stack (bf16 MXU operands, f32 accumulate) --
        idx = 0
        for _ in range(num_hidden_layers):
            W = w_refs[idx][...]                                   # bf16, lane-padded
            b = w_refs[idx + 1][...]                               # f32 (1, d_pad)
            idx += 2
            acc = jnp.dot(h, W, preferred_element_type=jnp.float32) + b
            h = jnp.maximum(acc, 0.0).astype(jnp.bfloat16)

        # ---- fused (final Linear ∘ StudentT args projection) -> (TB, 3*p_pad)
        Wc = w_refs[idx][...]                                      # bf16
        bc = w_refs[idx + 1][...]                                  # f32 (1, 3*p_pad)
        raw = jnp.dot(h, Wc, preferred_element_type=jnp.float32) + bc

        # Column layout: [df | loc | scale-param | data-scale], every block is
        # 128-lane aligned -> four unmasked, tile-aligned stores and softplus
        # only on the two blocks that need it.
        out_ref[:, 0:p_pad] = 2.0 + jnp.logaddexp(raw[:, 0:p_pad], 0.0)
        out_ref[:, p_pad:2 * p_pad] = raw[:, p_pad:2 * p_pad]
        out_ref[:, 2 * p_pad:3 * p_pad] = jnp.logaddexp(
            raw[:, 2 * p_pad:3 * p_pad], 0.0)
        out_ref[:, 3 * p_pad:3 * p_pad + scale_pad] = jnp.broadcast_to(
            scale, (scale.shape[0], scale_pad))

    return kernel


class FeedForwardNetworkPallas:
    """Deterministically initialized Pallas implementation of FeedForwardNetwork."""

    def __init__(self, prediction_length, context_length, hidden_dimensions,
                 seed=0):
        assert prediction_length > 0 and context_length > 0
        assert len(hidden_dimensions) > 0
        self.prediction_length = prediction_length
        self.context_length = context_length
        self.hidden_dimensions = hidden_dimensions

        dims = [context_length] + hidden_dimensions[:-1]
        key = jax.random.PRNGKey(seed)

        def lin_params(key, d_in, d_out, lo=-0.07, hi=0.07):
            kw, _ = jax.random.split(key)
            W = jax.random.uniform(kw, (d_in, d_out), jnp.float32, lo, hi)
            b = jnp.zeros((1, d_out), jnp.float32)
            return W, b

        # hidden Linear+ReLU stack (f32 masters, kept for the reference)
        self.hidden_params = []
        for d_in, d_out in zip(dims[:-1], dims[1:]):
            key, sub = jax.random.split(key)
            self.hidden_params.append(lin_params(sub, d_in, d_out))

        key, sub = jax.random.split(key)
        self.final_params = lin_params(
            sub, dims[-1], prediction_length * hidden_dimensions[-1])

        # StudentT args projection: H_last -> {df, loc, scale} fused to 3 cols.
        key, kw, kb = jax.random.split(key, 3)
        H = hidden_dimensions[-1]
        bound = 1.0 / (H ** 0.5)  # PyTorch default Linear init range
        self.proj_W = jax.random.uniform(kw, (H, 3), jnp.float32, -bound, bound)
        self.proj_b = jax.random.uniform(kb, (1, 3), jnp.float32, -bound, bound)

        # ---- padded, fused kernel weights (lane dims -> multiples of 128) ----
        P = prediction_length
        self._kernel_weights = []
        in_pad = context_length  # context itself stays unpadded (full-array lane dim)
        for (W, b) in self.hidden_params:
            d_in, d_out = W.shape
            out_pad = _round_up(d_out, LANE)
            Wp = jnp.zeros((in_pad, out_pad), jnp.float32).at[:d_in, :d_out].set(W)
            bp = jnp.zeros((1, out_pad), jnp.float32).at[:, :d_out].set(b[0])
            self._kernel_weights += [Wp.astype(jnp.bfloat16), bp]
            in_pad = out_pad

        d_last = dims[-1]
        P_pad = _round_up(P, LANE)
        Wf, bf = self.final_params
        # (d_last, P, H) x (H, 3) -> (d_last, 3, P)
        W3 = jnp.einsum('dph,ht->dtp', Wf.reshape(d_last, P, H), self.proj_W)
        # (P, H) x (H, 3) + (1, 3) -> (3, P)
        b3 = (bf.reshape(P, H) @ self.proj_W + self.proj_b).T
        W3p = jnp.zeros((in_pad, 3, P_pad), jnp.float32).at[:d_last, :, :P].set(W3)
        b3p = jnp.zeros((3, P_pad), jnp.float32).at[:, :P].set(b3)
        self._kernel_weights += [
            W3p.reshape(in_pad, 3 * P_pad).astype(jnp.bfloat16),
            b3p.reshape(1, 3 * P_pad).astype(jnp.float32),
        ]

        self._p_pad = P_pad
        self._scale_pad = LANE
        self._out_width = 3 * P_pad + LANE
        self._weight_bytes = int(sum(w.size * w.dtype.itemsize
                                     for w in self._kernel_weights))

    def __call__(self, context):
        B = context.shape[0]
        C = self.context_length
        P = self.prediction_length
        P_pad = self._p_pad
        W_out = self._out_width
        n_hidden = len(self.hidden_params)

        # ---- batch tiling: multiple of 16 (bf16 sublane packing), sized from
        #      a VMEM budget, >= 2 grid steps when possible (v7x megacore) ----
        B16 = _round_up(max(B, 1), 16)
        per_row = 2 * 4 * (C + W_out)                 # double-buffered in + out
        budget = (40 << 20) - 2 * self._weight_bytes  # keep well under 48 MiB limit
        TB_cap = max(16, min(4096, (budget // per_row) // 16 * 16))
        n_steps = max(1, _cdiv(B16, TB_cap))
        if n_steps == 1 and B16 >= 32:
            n_steps = 2                               # let ("parallel",) use both TCs on v7x
        TB = _round_up(_cdiv(B16, n_steps), 16)
        B_pad = TB * n_steps
        if B_pad != B:
            context = jnp.pad(context, ((0, B_pad - B), (0, 0)))
        # TODO(synk): context could be cast to bf16 on the host for a further
        # bandwidth win once exact f32 scale parity is not required.

        kernel = _make_ffn_kernel(n_hidden, P_pad, self._scale_pad)

        # TODO(synk): pipeline_mode=pl.Buffered(1) on the weight specs would
        # halve their resident VMEM footprint (helps tile headroom on v7x).
        weight_specs = [pl.BlockSpec(w.shape, lambda i: (0, 0))
                        for w in self._kernel_weights]
        in_specs = [pl.BlockSpec((TB, C), lambda i: (i, 0))] + weight_specs
        out_specs = pl.BlockSpec((TB, W_out), lambda i: (i, 0))
        out_shape = jax.ShapeDtypeStruct((B_pad, W_out), jnp.float32)

        # VMEM limit from actual buffer sizes, capped for v7x's 64 MiB VMEM.
        tile_bytes = 2 * TB * 4 * (C + W_out)
        vmem_limit = int(min(max(tile_bytes + 2 * self._weight_bytes + (4 << 20),
                                 16 << 20), 48 << 20))

        # Advisory cost estimate for XLA scheduling around this mem-bound call.
        flops = 0
        for w in self._kernel_weights[0::2]:
            flops += 2 * B_pad * w.shape[0] * w.shape[1]
        transcendentals = 4 * B_pad * P_pad + B_pad   # 2x softplus blocks + recip
        bytes_accessed = B_pad * 4 * (C + W_out) + self._weight_bytes
        cost = pl.CostEstimate(flops=int(flops),
                               transcendentals=int(transcendentals),
                               bytes_accessed=int(bytes_accessed))

        packed = pl.pallas_call(
            kernel,
            out_shape=out_shape,
            grid=(B_pad // TB,),
            in_specs=in_specs,
            out_specs=out_specs,
            compiler_params=pltpu.CompilerParams(
                dimension_semantics=("parallel",),
                vmem_limit_bytes=vmem_limit),
            cost_estimate=cost,
        )(context, *self._kernel_weights)

        df = packed[:B, :P]
        loc = packed[:B, P_pad:P_pad + P]
        sc = packed[:B, 2 * P_pad:2 * P_pad + P]
        scale = packed[:B, 3 * P_pad:3 * P_pad + 1]
        return (df, loc, sc), jnp.zeros_like(scale), scale

    # Pure-JAX f32 reference (mirrors the PyTorch forward) for verification.
    def reference(self, context):
        scale = jnp.maximum(jnp.mean(jnp.abs(context), axis=1, keepdims=True),
                            1e-5)
        h = context / scale
        for W, b in self.hidden_params:
            h = jax.nn.relu(h @ W + b)
        nn_out = h @ self.final_params[0] + self.final_params[1]
        B = context.shape[0]
        nn_out = nn_out.reshape(B, self.prediction_length,
                                self.hidden_dimensions[-1])
        raw = nn_out @ self.proj_W + self.proj_b[0]
        df = 2.0 + jax.nn.softplus(raw[..., 0])
        loc = raw[..., 1]
        sc = jax.nn.softplus(raw[..., 2])
        return (df, loc, sc), jnp.zeros_like(scale), scale


if __name__ == "__main__":
    B = 8
    context_length = 16
    prediction_length = 4
    hidden_dimensions = [32, 16]

    model = FeedForwardNetworkPallas(prediction_length, context_length,
                                     hidden_dimensions, seed=0)

    key = jax.random.PRNGKey(0)
    context = jax.random.normal(key, (B, context_length), jnp.float32)

    (df, loc, sc), zeros, scale = model(context)
    jax.block_until_ready((df, loc, sc, zeros, scale))

    # sanity check against pure-JAX f32 reference (kernel uses bf16 matmul
    # operands + fused projection, so tolerance is loosened accordingly).
    (df_r, loc_r, sc_r), _, scale_r = model.reference(context)
    assert jnp.allclose(df, df_r, atol=3e-2, rtol=3e-2), "df mismatch"
    assert jnp.allclose(loc, loc_r, atol=3e-2, rtol=3e-2), "loc mismatch"
    assert jnp.allclose(sc, sc_r, atol=3e-2, rtol=3e-2), "scale-param mismatch"
    assert jnp.allclose(scale, scale_r, atol=1e-6), "data-scale mismatch"

    print("KERNEL_OK")
</pallas_src>

<mosaic_0001>
module attributes {stable_mosaic.version = 11 : i64} {
  func.func @kernel(%arg0: i32, %arg1: memref<16x16xf32, #tpu.memory_space<vmem>>, %arg2: memref<16x128xbf16, #tpu.memory_space<vmem>>, %arg3: memref<1x128xf32, #tpu.memory_space<vmem>>, %arg4: memref<128x384xbf16, #tpu.memory_space<vmem>>, %arg5: memref<1x384xf32, #tpu.memory_space<vmem>>, %arg6: memref<16x512xf32, #tpu.memory_space<vmem>>) attributes {dimension_semantics = [#tpu.dimension_semantics<parallel>], iteration_bounds = array<i64: 1>, scalar_prefetch = 0 : i64, scratch_operands = 0 : i64, tpu.core_type = #tpu.core_type<tc>, window_params = [{transform_indices = @transform_0, window_bounds = array<i64: 16, 16>}, {pipeline_mode = #tpu.pipeline_mode<synchronous>, transform_indices = @transform_1, window_bounds = array<i64: 16, 128>}, {pipeline_mode = #tpu.pipeline_mode<synchronous>, transform_indices = @transform_2, window_bounds = array<i64: 1, 128>}, {pipeline_mode = #tpu.pipeline_mode<synchronous>, transform_indices = @transform_3, window_bounds = array<i64: 128, 384>}, {pipeline_mode = #tpu.pipeline_mode<synchronous>, transform_indices = @transform_4, window_bounds = array<i64: 1, 384>}, {transform_indices = @transform_5, window_bounds = array<i64: 16, 512>}]} {
    %c0 = arith.constant 0 : index
    %c0_0 = arith.constant 0 : index
    %0 = vector.load %arg1[%c0, %c0_0] : memref<16x16xf32, #tpu.memory_space<vmem>>, vector<16x16xf32>
    %1 = math.absf %0 : vector<16x16xf32>
    %cst = arith.constant dense<0.000000e+00> : vector<16xf32>
    %2 = vector.multi_reduction <add>, %1, %cst [1] : vector<16x16xf32> to vector<16xf32>
    %3 = vector.shape_cast %2 : vector<16xf32> to vector<16x1xf32>
    %cst_1 = arith.constant 1.600000e+01 : f32
    %4 = vector.broadcast %cst_1 : f32 to vector<16x1xf32>
    %5 = arith.divf %3, %4 : vector<16x1xf32>
    %cst_2 = arith.constant 9.99999974E-6 : f32
    %6 = vector.broadcast %cst_2 : f32 to vector<16x1xf32>
    %7 = arith.maximumf %5, %6 : vector<16x1xf32>
    %8 = tpu.reciprocal %7 {approx = true} : vector<16x1xf32> -> vector<16x1xf32>
    %9 = vector.broadcast %8 : vector<16x1xf32> to vector<16x16xf32>
    %10 = arith.mulf %0, %9 : vector<16x16xf32>
    %11 = arith.truncf %10 : vector<16x16xf32> to vector<16x16xbf16>
    %c0_3 = arith.constant 0 : index
    %c0_4 = arith.constant 0 : index
    %12 = vector.load %arg2[%c0_3, %c0_4] : memref<16x128xbf16, #tpu.memory_space<vmem>>, vector<16x128xbf16>
    %c0_5 = arith.constant 0 : index
    %c0_6 = arith.constant 0 : index
    %13 = vector.load %arg3[%c0_5, %c0_6] : memref<1x128xf32, #tpu.memory_space<vmem>>, vector<1x128xf32>
    %cst_7 = arith.constant dense<0.000000e+00> : vector<16x128xf32>
    %14 = tpu.matmul %11, %12, %cst_7 {dimension_numbers = #tpu.dot_dimension_numbers<[1], [0], [0], [1], [0, 0, 1, 1], [], []>} : vector<16x16xbf16>, vector<16x128xbf16>, vector<16x128xf32> -> vector<16x128xf32>
    %15 = vector.broadcast %13 : vector<1x128xf32> to vector<16x128xf32>
    %16 = arith.addf %14, %15 : vector<16x128xf32>
    %cst_8 = arith.constant 0.000000e+00 : f32
    %17 = vector.broadcast %cst_8 : f32 to vector<16x128xf32>
    %18 = arith.maximumf %16, %17 : vector<16x128xf32>
    %19 = arith.truncf %18 : vector<16x128xf32> to vector<16x128xbf16>
    %c0_9 = arith.constant 0 : index
    %c0_10 = arith.constant 0 : index
    %20 = vector.load %arg4[%c0_9, %c0_10] : memref<128x384xbf16, #tpu.memory_space<vmem>>, vector<128x384xbf16>
    %c0_11 = arith.constant 0 : index
    %c0_12 = arith.constant 0 : index
    %21 = vector.load %arg5[%c0_11, %c0_12] : memref<1x384xf32, #tpu.memory_space<vmem>>, vector<1x384xf32>
    %cst_13 = arith.constant dense<0.000000e+00> : vector<16x384xf32>
    %22 = tpu.matmul %19, %20, %cst_13 {dimension_numbers = #tpu.dot_dimension_numbers<[1], [0], [0], [1], [0, 0, 1, 1], [], []>} : vector<16x128xbf16>, vector<128x384xbf16>, vector<16x384xf32> -> vector<16x384xf32>
    %23 = vector.broadcast %21 : vector<1x384xf32> to vector<16x384xf32>
    %24 = arith.addf %22, %23 : vector<16x384xf32>
    %25 = vector.extract_strided_slice %24 {offsets = [0, 0], sizes = [16, 128], strides = [1, 1]} : vector<16x384xf32> to vector<16x128xf32>
    %cst_14 = arith.constant 0.000000e+00 : f32
    %26 = vector.broadcast %cst_14 : f32 to vector<16x128xf32>
    %27 = arith.maximumf %25, %26 : vector<16x128xf32>
    %28 = vector.broadcast %cst_14 : f32 to vector<16x128xf32>
    %29 = arith.subf %25, %28 : vector<16x128xf32>
    %30 = arith.cmpf one, %29, %29 : vector<16x128xf32>
    %31 = vector.broadcast %cst_14 : f32 to vector<16x128xf32>
    %32 = arith.addf %25, %31 : vector<16x128xf32>
    %33 = math.absf %29 : vector<16x128xf32>
    %cst_15 = arith.constant 0.000000e+00 : f32
    %34 = vector.broadcast %cst_15 : f32 to vector<16x128xf32>
    %35 = arith.subf %34, %33 : vector<16x128xf32>
    %36 = math.exp %35 : vector<16x128xf32>
    %37 = math.log1p %36 : vector<16x128xf32>
    %38 = arith.addf %27, %37 : vector<16x128xf32>
    %39 = arith.select %30, %32, %38 : vector<16x128xi1>, vector<16x128xf32>
    %cst_16 = arith.constant 2.000000e+00 : f32
    %40 = vector.broadcast %cst_16 : f32 to vector<16x128xf32>
    %41 = arith.addf %40, %39 : vector<16x128xf32>
    %c0_17 = arith.constant 0 : index
    %c0_18 = arith.constant 0 : index
    %42 = vector.load %arg6[%c0_17, %c0_18] : memref<16x512xf32, #tpu.memory_space<vmem>>, vector<16x128xf32>
    tpu.vector_store %arg6[%c0_17, %c0_18], %41 {strides = array<i32>} : memref<16x512xf32, #tpu.memory_space<vmem>>, vector<16x128xf32>,
    %43 = vector.extract_strided_slice %24 {offsets = [0, 128], sizes = [16, 128], strides = [1, 1]} : vector<16x384xf32> to vector<16x128xf32>
    %c0_19 = arith.constant 0 : index
    %c128 = arith.constant 128 : index
    %44 = vector.load %arg6[%c0_19, %c128] : memref<16x512xf32, #tpu.memory_space<vmem>>, vector<16x128xf32>
    tpu.vector_store %arg6[%c0_19, %c128], %43 {strides = array<i32>} : memref<16x512xf32, #tpu.memory_space<vmem>>, vector<16x128xf32>,
    %45 = vector.extract_strided_slice %24 {offsets = [0, 256], sizes = [16, 128], strides = [1, 1]} : vector<16x384xf32> to vector<16x128xf32>
    %cst_20 = arith.constant 0.000000e+00 : f32
    %46 = vector.broadcast %cst_20 : f32 to vector<16x128xf32>
    %47 = arith.maximumf %45, %46 : vector<16x128xf32>
    %48 = vector.broadcast %cst_20 : f32 to vector<16x128xf32>
    %49 = arith.subf %45, %48 : vector<16x128xf32>
    %50 = arith.cmpf one, %49, %49 : vector<16x128xf32>
    %51 = vector.broadcast %cst_20 : f32 to vector<16x128xf32>
    %52 = arith.addf %45, %51 : vector<16x128xf32>
    %53 = math.absf %49 : vector<16x128xf32>
    %cst_21 = arith.constant 0.000000e+00 : f32
    %54 = vector.broadcast %cst_21 : f32 to vector<16x128xf32>
    %55 = arith.subf %54, %53 : vector<16x128xf32>
    %56 = math.exp %55 : vector<16x128xf32>
    %57 = math.log1p %56 : vector<16x128xf32>
    %58 = arith.addf %47, %57 : vector<16x128xf32>
    %59 = arith.select %50, %52, %58 : vector<16x128xi1>, vector<16x128xf32>
    %c0_22 = arith.constant 0 : index
    %c256 = arith.constant 256 : index
    %60 = vector.load %arg6[%c0_22, %c256] : memref<16x512xf32, #tpu.memory_space<vmem>>, vector<16x128xf32>
    tpu.vector_store %arg6[%c0_22, %c256], %59 {strides = array<i32>} : memref<16x512xf32, #tpu.memory_space<vmem>>, vector<16x128xf32>,
    %61 = vector.shape_cast %7 : vector<16x1xf32> to vector<16x1xf32>
    %62 = vector.broadcast %61 : vector<16x1xf32> to vector<16x128xf32>
    %c0_23 = arith.constant 0 : index
    %c384 = arith.constant 384 : index
    %63 = vector.load %arg6[%c0_23, %c384] : memref<16x512xf32, #tpu.memory_space<vmem>>, vector<16x128xf32>
    tpu.vector_store %arg6[%c0_23, %c384], %62 {strides = array<i32>} : memref<16x512xf32, #tpu.memory_space<vmem>>, vector<16x128xf32>,
    return
  }
  func.func @transform_0(%arg0: i32) -> (i32, i32) {
    %c0_i32 = arith.constant 0 : i32
    %c0_i32_0 = arith.constant 0 : i32
    return %arg0, %c0_i32 : i32, i32
  }
  func.func @transform_1(%arg0: i32) -> (i32, i32) {
    %c0_i32 = arith.constant 0 : i32
    %c0_i32_0 = arith.constant 0 : i32
    %c0_i32_1 = arith.constant 0 : i32
    return %c0_i32, %c0_i32_0 : i32, i32
  }
  func.func @transform_2(%arg0: i32) -> (i32, i32) {
    %c0_i32 = arith.constant 0 : i32
    %c0_i32_0 = arith.constant 0 : i32
    %c0_i32_1 = arith.constant 0 : i32
    return %c0_i32, %c0_i32_0 : i32, i32
  }
  func.func @transform_3(%arg0: i32) -> (i32, i32) {
    %c0_i32 = arith.constant 0 : i32
    %c0_i32_0 = arith.constant 0 : i32
    %c0_i32_1 = arith.constant 0 : i32
    return %c0_i32, %c0_i32_0 : i32, i32
  }
  func.func @transform_4(%arg0: i32) -> (i32, i32) {
    %c0_i32 = arith.constant 0 : i32
    %c0_i32_0 = arith.constant 0 : i32
    %c0_i32_1 = arith.constant 0 : i32
    return %c0_i32, %c0_i32_0 : i32, i32
  }
  func.func @transform_5(%arg0: i32) -> (i32, i32) {
    %c0_i32 = arith.constant 0 : i32
    %c0_i32_0 = arith.constant 0 : i32
    return %arg0, %c0_i32 : i32, i32
  }
}

</mosaic_0001>

<bundles_post_ra>
// kernel: tpu_custom_call.1
= control target key start
LH: loop header
LB: loop body
LE: loop exit
PB: predicated region body
PF: predicated region fallthrough
CT: control target
= control target key end

     0   :  { %10 = vsyncpa [#allocation3], 0  ;;  %s882_s0 = inlined_call_operand.hbm [shape: f32[16,16], index: 0, kind: input, shape index: {}]   ;;  %s883_s1 = inlined_call_operand.hbm [shape: bf16[16,128], index: 1, kind: input, shape index: {}]   ;;  %s884_s2 = inlined_call_operand.vmem [shape: f32[1,128], index: 2, kind: input, shape index: {}]   ;;  %s885_s3 = inlined_call_operand.hbm [shape: bf16[128,384], index: 3, kind: input, shape index: {}]   ;;  %s886_s4 = inlined_call_operand.vmem [shape: f32[1,384], index: 4, kind: input, shape index: {}]   ;;  %s887_s5 = inlined_call_operand.hbm [shape: f32[16,512], index: 5, kind: output, shape index: {}]  }
   0x1   :  { %11 = vsyncpa [#allocation6], 0 }
   0x2   :  { %12 = vsyncpa [#allocation4], 0  ;;  %s733_s18 = smov [#allocation5]   ;;  %s639_s22 = scalar_lea.hbm %s883_s1, 128 }
   0x3   :  { %s30_s19 = sshll.u32 %s733_s18, 4  ;;  %p640_p0 = scmp.ne.s32.totalorder %s883_s1, %s639_s22  ;;  %s31_s19 = int_to_ptr.vmem [resolvable:$true] %s30_s19 }
   0x4   :  { %p643_p1 = scmp.lt.u32.totalorder %s639_s22, %s883_s1 }
   0x6   :  { %p645_p2 = pnand %p643_p1, %p640_p0 }
   0x8   :  { %648 = shalt.err (!%p645_p2)
}
   0x9   :  { %s649_s27 = scalar_lea.vmem %s31_s19, 128  ;;  %p654_p4 = scmp.lt.s32.totalorder %s31_s19, %s31_s19 }
   0xa   :  { %p650_p3 = scmp.ne.s32.totalorder %s31_s19, %s649_s27  ;;  %p655_p5 = scmp.lt.s32.totalorder %s649_s27, %s649_s27 }
   0xc   :  { %p656_p6 = por %p655_p5, %p654_p4 }
   0xe   :  { %p657_p7 = pnand %p656_p6, %p650_p3 }
  0x10   :  { %660 = shalt.err (!%p657_p7)
}
  0x11   :  { %s734_s28 = smov 64   ;;  %s735_s29 = smov 4  }
  0x12   :  { %36 = dma.hbm_to_vmem [thread:$0]  %s883_s1, 128, %s31_s19, [#allocation6], %s734_s28, %s734_s28, %s735_s29  }
  0x13   :  { %s736_s7 = smov [#allocation2]   ;;  %s661_s11 = scalar_lea.hbm %s882_s0, 256 }
  0x14   :  { %s18_s8 = sshll.u32 %s736_s7, 4  ;;  %p662_p8 = scmp.ne.s32.totalorder %s882_s0, %s661_s11  ;;  %s19_s8 = int_to_ptr.vmem [resolvable:$true] %s18_s8 }
  0x15   :  { %p665_p9 = scmp.lt.u32.totalorder %s661_s11, %s882_s0 }
  0x17   :  { %p667_p10 = pnand %p665_p9, %p662_p8 }
  0x19   :  { %670 = shalt.err (!%p667_p10)
}
  0x1a   :  { %s671_s16 = scalar_lea.vmem %s19_s8, 256  ;;  %p676_p12 = scmp.lt.s32.totalorder %s19_s8, %s19_s8 }
  0x1b   :  { %p672_p11 = scmp.ne.s32.totalorder %s19_s8, %s671_s16  ;;  %p677_p13 = scmp.lt.s32.totalorder %s671_s16, %s671_s16 }
  0x1d   :  { %p678_p0 = por %p677_p13, %p676_p12 }
  0x1f   :  { %p679_p1 = pnand %p678_p0, %p672_p11 }
  0x21   :  { %682 = shalt.err (!%p679_p1)
}
  0x22   :  { %s737_s1 = smov 128   ;;  %s738_s17 = smov 8  }
  0x23   :  { %24 = dma.hbm_to_vmem [thread:$0]  %s882_s0, 256, %s19_s8, [#allocation3], %s737_s1, %s737_s1, %s738_s17  }
  0x24   :  { %s739_s20 = smov [#allocation7]   ;;  %s683_s24 = scalar_lea.hbm %s885_s3, 3072 }
  0x25   :  { %s44_s21 = sshll.u32 %s739_s20, 4  ;;  %p684_p2 = scmp.ne.s32.totalorder %s885_s3, %s683_s24  ;;  %s45_s21 = int_to_ptr.vmem [resolvable:$true] %s44_s21 }
  0x26   :  { %p687_p3 = scmp.lt.u32.totalorder %s683_s24, %s885_s3 }
  0x28   :  { %p689_p4 = pnand %p687_p3, %p684_p2 }
  0x2a   :  { %692 = shalt.err (!%p689_p4)
}
  0x2b   :  { %s693_s29 = scalar_lea.vmem %s45_s21, 3072  ;;  %p698_p6 = scmp.lt.s32.totalorder %s45_s21, %s45_s21 }
  0x2c   :  { %p694_p5 = scmp.ne.s32.totalorder %s45_s21, %s693_s29  ;;  %p699_p7 = scmp.lt.s32.totalorder %s693_s29, %s693_s29 }
  0x2e   :  { %p700_p8 = por %p699_p7, %p698_p6 }
  0x30   :  { %p701_p9 = pnand %p700_p8, %p694_p5 }
  0x32   :  { %704 = shalt.err (!%p701_p9)
}
  0x33   :  { %s740_s0 = smov 192   ;;  %s741_s30 = smov 12  }
  0x34   :  { %50 = dma.hbm_to_vmem [thread:$0]  %s885_s3, 3072, %s45_s21, [#allocation6], %s740_s0, %s740_s0, %s741_s30  }
  0x35   :  { %727 = dma.done.wait [#allocation3], 256  }
  0x36   :  { %728 = vsyncadd [#allocation3], 4294967040 }
  0x37   :  { %729 = dma.done.wait [#allocation6], 3200  }
  0x38   :  { %730 = vsyncadd [#allocation6], 4294964096  ;;  %v63_v0 = vld [vmem:[#allocation2] sm:$0xff]  ;;  %vm67_vm0 = vcmask 130048   ;;  %v64_v1 = vld [vmem:[#allocation2 + $0x8] sm:$0xff]  ;;  %v742_v7 = vmov 0.0   ;;  %v180_v54 = vlaneseq }
  0x39   :  { %v65_v2 = vand.u32 2147483647, %v63_v0  ;;  %v66_v3 = vand.u32 2147483647, %v64_v1  ;;  %v586_v6 = vld [vmem:[#allocation5] sm:$0xff]   ;;  %545 = vmatprep.subr.bf16.mxu0 %v742_v7  ;;  %vm743_vm1 = vmmov 0  }
  0x3a   :  { %547 = vmatprep.mubr.msk.bf16.mxu0 %vm743_vm1, %v742_v7  ;;  %546 = vmatpush3.bf16.msra.mxu0 %v586_v6  ;;  %v587_v8 = vld [vmem:[#allocation7 + $0x4] ss:$12 sps:$4 sm:$0xff]   ;;  %v589_v9 = vld [vmem:[#allocation7] ss:$12 sps:$4 sm:$0xff]   ;;  %v591_v10 = vld [vmem:[#allocation7 + $0x1c] ss:$12 sps:$4 sm:$0xff]  }
  0x3b   :  { %v68_v4 = vsel %vm67_vm0, %v65_v2, 0.0  ;;  %v71_v5 = vsel %vm67_vm0, %v66_v3, 0.0  ;;  %551 = vmatprep.subr.bf16.mxu0 %v742_v7  ;;  %323 = vmatprep.subr.bf16.mxu1 %v587_v8  ;;  %v593_v11 = vld [vmem:[#allocation7 + $0x18] ss:$12 sps:$4 sm:$0xff]   ;;  %v595_v12 = vld [vmem:[#allocation7 + $0x34] ss:$12 sps:$4 sm:$0xff]  }
  0x3c   :  { %69 = vadd.xlane.f32.xlu0 %v68_v4  ;;  %324 = vmatpush1.bf16.msra.mxu1 %v589_v9  ;;  %v597_v13 = vld [vmem:[#allocation7 + $0x30] ss:$12 sps:$4 sm:$0xff]   ;;  %v599_v14 = vld [vmem:[#allocation7 + $0x4c] ss:$12 sps:$4 sm:$0xff]   ;;  %v601_v15 = vld [vmem:[#allocation7 + $0x48] ss:$12 sps:$4 sm:$0xff]  }
  0x3d   :  { %325 = vmatprep.subr.bf16.mxu1 %v591_v10  ;;  %v603_v16 = vld [vmem:[#allocation7 + $0x64] ss:$12 sps:$4 sm:$0xff]   ;;  %v605_v17 = vld [vmem:[#allocation7 + $0x60] ss:$12 sps:$4 sm:$0xff]   ;;  %v607_v18 = vld [vmem:[#allocation7 + $0x7c] ss:$12 sps:$4 sm:$0xff]  }
  0x3e   :  { %v609_v19 = vld [vmem:[#allocation7 + $0x78] ss:$12 sps:$4 sm:$0xff]   ;;  %v590_v30 = vld [vmem:[#allocation7 + $0x8] ss:$12 sps:$4 sm:$0xff]   ;;  %v594_v32 = vld [vmem:[#allocation7 + $0x20] ss:$12 sps:$4 sm:$0xff]  }
  0x3f   :  { %v598_v33 = vld [vmem:[#allocation7 + $0x38] ss:$12 sps:$4 sm:$0xff]   ;;  %v602_v34 = vld [vmem:[#allocation7 + $0x50] ss:$12 sps:$4 sm:$0xff]   ;;  %v606_v35 = vld [vmem:[#allocation7 + $0x68] ss:$12 sps:$4 sm:$0xff]  }
  0x40   :  { %72 = vadd.xlane.f32.xlu0 %v71_v5  ;;  %326 = vmatpush1.bf16.msra.mxu1 %v593_v11  ;;  %v610_v36 = vld [vmem:[#allocation7 + $0x80] ss:$12 sps:$4 sm:$0xff]   ;;  %v613_v38 = vld [vmem:[#allocation7 + $0x90] ss:$12 sps:$4 sm:$0xff]   ;;  %v614_v39 = vld [vmem:[#allocation7 + $0x98] ss:$12 sps:$4 sm:$0xff]  }
  0x41   :  { %327 = vmatprep.subr.bf16.mxu1 %v595_v12  ;;  %v611_v37 = vld [vmem:[#allocation7 + $0x94] ss:$12 sps:$4 sm:$0xff]   ;;  %v615_v40 = vld [vmem:[#allocation7 + $0xac] ss:$12 sps:$4 sm:$0xff]   ;;  %v618_v42 = vld [vmem:[#allocation7 + $0xb0] ss:$12 sps:$4 sm:$0xff]  }
  0x42   :  { %v617_v41 = vld [vmem:[#allocation7 + $0xa8] ss:$12 sps:$4 sm:$0xff]   ;;  %v744_v43 = vmov 0   ;;  %v181_v55 = vshrl.u32 %v180_v54, 7 }
  0x43   :  { %355 = vmatprep.mubr.bf16.mxu1 %v744_v43  ;;  %v507_v44 = vld [vmem:[%s884_s2] ss:$0 sm:$0xff]  ;;  %s745_s2 = smov [#allocation8]  }
  0x44   :  { %328 = vmatpush1.bf16.msra.mxu1 %v597_v13  ;;  %v182_v56 = vsub.s32 0, %v181_v55  ;;  %v190_v57 = vsub.s32 2, %v181_v55  ;;  %v178_v58 = vld [vmem:[%s886_s4] sm:$0x7]  ;;  %v186_v59 = vsub.s32 1, %v181_v55  ;;  %s494_s4 = sshll.u32 %s745_s2, 4  ;;  %s495_s4 = int_to_ptr.vmem [resolvable:$true] %s494_s4 }
  0x45   :  { %329 = vmatprep.subr.bf16.mxu1 %v599_v14  ;;  %s705_s11 = scalar_lea.vmem %s495_s4, 1024  ;;  %p710_p11 = scmp.lt.s32.totalorder %s495_s4, %s495_s4 }
  0x46   :  { %v183_v60 = vrot.slane %v178_v58, %v182_v56  ;;  %v191_v61 = vrot.slane %v178_v58, %v190_v57  ;;  %v187_v62 = vrot.slane %v178_v58, %v186_v59  ;;  %p706_p10 = scmp.ne.s32.totalorder %s495_s4, %s705_s11  ;;  %p711_p12 = scmp.lt.s32.totalorder %s705_s11, %s705_s11 }
  0x48   :  { %330 = vmatpush1.bf16.msra.mxu1 %v601_v15  ;;  %p712_p13 = por %p711_p12, %p710_p11 }
  0x49   :  { %331 = vmatprep.subr.bf16.mxu1 %v603_v16 }
  0x4a   :  { %p713_p0 = pnand %p712_p13, %p706_p10 }
  0x4c   :  { %332 = vmatpush1.bf16.msra.mxu1 %v605_v17 }
  0x4d   :  { %333 = vmatprep.subr.bf16.mxu1 %v607_v18 }
  0x50   :  { %334 = vmatpush1.bf16.msra.mxu1 %v609_v19 }
  0x51   :  { %335 = vmatprep.subr.bf16.mxu1 %v611_v37 }
  0x54   :  { %336 = vmatpush1.bf16.msra.mxu1 %v613_v38 }
  0x55   :  { %337 = vmatprep.subr.bf16.mxu1 %v615_v40 }
  0x58   :  { %338 = vmatpush1.bf16.msra.mxu1 %v617_v41 }
  0xc9   :  { %v70_v20 = vpop.xlane.xlu0 %69 }
  0xca   :  { %v75_v21 = vmul.f32 0.0625, %v70_v20 }
  0xcc   :  { %v77_v22 = vmax.f32 %v75_v21, 1e-05 }
  0xcd   :  { %v73_v23 = vpop.xlane.xlu0 %72 }
  0xce   :  { %487 = vst [vmem:[#allocation8 + $0x18] sm:$0xff] %v77_v22  ;;  %v76_v24 = vmul.f32 0.0625, %v73_v23  ;;  %619 = vrcp.f32 %v77_v22 }
  0xd0   :  { %v78_v25 = vmax.f32 %v76_v24, 1e-05 }
  0xd2   :  { %621 = vrcp.f32 %v78_v25  ;;  %488 = vst [vmem:[#allocation8 + $0x38] sm:$0xff] %v78_v25 }
  0xd8   :  { %v620_v26 = vpop.eup %619 }
  0xd9   :  { %v81_v28 = vmul.f32 %v620_v26, %v63_v0 }
  0xdc   :  { %v622_v27 = vpop.eup %621 }
  0xdd   :  { %v82_v29 = vmul.f32 %v622_v27, %v64_v1 }
  0xdf   :  { %v83_v31 = vpack.c.bf16 %v82_v29, %v81_v28 }
  0xe1   :  { %548 = vmatmul.mubr.msk.bf16.vlgmr.msra.gmra.mrb[0].mxu0 %vm67_vm0, %v83_v31 }
  0xe2   :  { %552 = vmatpush3.bf16.msra.mxu0 %v590_v30  ;;  %567 = vmatprep.mubr.msk.bf16.mxu0 %vm743_vm1, %v742_v7 }
  0xe3   :  { %553 = vmatprep.subr.bf16.mxu0 %v742_v7 }
  0xe6   :  { %554 = vmatpush3.bf16.msra.mxu0 %v594_v32 }
  0xe7   :  { %555 = vmatprep.subr.bf16.mxu0 %v742_v7 }
  0xea   :  { %556 = vmatpush3.bf16.msra.mxu0 %v598_v33 }
  0xeb   :  { %557 = vmatprep.subr.bf16.mxu0 %v742_v7 }
  0xee   :  { %558 = vmatpush3.bf16.msra.mxu0 %v602_v34 }
  0xef   :  { %559 = vmatprep.subr.bf16.mxu0 %v742_v7 }
  0xf2   :  { %560 = vmatpush3.bf16.msra.mxu0 %v606_v35 }
  0xf3   :  { %561 = vmatprep.subr.bf16.mxu0 %v742_v7 }
  0xf6   :  { %562 = vmatpush3.bf16.msra.mxu0 %v610_v36 }
  0xf7   :  { %563 = vmatprep.subr.bf16.mxu0 %v742_v7 }
  0xfa   :  { %564 = vmatpush3.bf16.msra.mxu0 %v614_v39 }
  0xfb   :  { %565 = vmatprep.subr.bf16.mxu0 %v742_v7 }
  0xfe   :  { %566 = vmatpush3.bf16.msra.mxu0 %v618_v42 }
 0x1b4   :  { %v136_v45 = vpop.f32.mrb[0].mxu0 }
 0x1b5   :  { %v137_v46 = vadd.f32 %v507_v44, %v136_v45  ;;  %v549_v47 = vpop.f32.mrb[1].mxu0 }
 0x1b6   :  { %v139_v48 = vpop.f32.mrb[2].mxu0 }
 0x1b7   :  { %v140_v49 = vadd.f32 %v507_v44, %v139_v48  ;;  %v550_v50 = vpop.f32.mrb[3].mxu0  ;;  %v143_v51 = vmax.f32 %v137_v46, 0.0 }
 0x1b9   :  { %v144_v52 = vmax.f32 %v140_v49, 0.0 }
 0x1bb   :  { %v145_v53 = vpack.c.bf16 %v144_v52, %v143_v51 }
 0x1bd   :  { %356 = vmatmul.mubr.bf16.vlgmr.msra.gmra.mrb[0].mxu1 %v145_v53  ;;  %568 = vmatmul.mubr.bf16.vlgmr.msra.gmra.mrb[4].mxu0 %v145_v53 }
 0x290   :  { %v357_v63 = vpop.f32.mrb[0].mxu1  ;;  %v400_v0 = vpop.f32.mrb[4].mxu0 }
 0x291   :  { %v836_v1 = vadd.f32 %v357_v63, %v183_v60  ;;  %v838_v2 = vadd.f32 %v400_v0, %v191_v61  ;;  %v359_v3 = vpop.f32.mrb[1].mxu1  ;;  %v569_v4 = vpop.f32.mrb[5].mxu0 }
 0x292   :  { %v360_v5 = vadd.f32 %v359_v3, %v187_v62  ;;  %v361_v6 = vpop.f32.mrb[2].mxu1  ;;  %v403_v7 = vpop.f32.mrb[6].mxu0 }
 0x293   :  { %v413_v8 = vand.u32 2147483647, %v836_v1  ;;  %v363_v9 = vpop.f32.mrb[3].mxu1  ;;  %v570_v10 = vpop.f32.mrb[7].mxu0  ;;  %v455_v11 = vand.u32 2147483647, %v838_v2  ;;  %v842_v12 = vadd.f32 %v361_v6, %v183_v60  ;;  %v844_v13 = vadd.f32 %v403_v7, %v191_v61 }
 0x294   :  { %447 = vst [vmem:[#allocation8 + $0x8] sm:$0xff] %v360_v5  ;;  %v364_v15 = vadd.f32 %v363_v9, %v187_v62  ;;  %v407_v42 = vmax.f32 %v836_v1, 0.0  ;;  %vm409_vm2 = vcmp.ne.f32.partialorder %v836_v1, %v836_v1  ;;  %v449_v43 = vmax.f32 %v838_v2, 0.0 }
 0x295   :  { %v415_v14 = vsub.f32 0.0, %v413_v8  ;;  %v457_v16 = vsub.f32 0.0, %v455_v11  ;;  %v414_v17 = vand.u32 2147483647, %v842_v12  ;;  %v456_v19 = vand.u32 2147483647, %v844_v13 }
 0x296   :  { %448 = vst [vmem:[#allocation8 + $0x28] sm:$0xff] %v364_v15  ;;  %vm451_vm4 = vcmp.ne.f32.partialorder %v838_v2, %v838_v2  ;;  %v408_v55 = vmax.f32 %v842_v12, 0.0  ;;  %v450_v4 = vmax.f32 %v844_v13, 0.0  ;;  %vm410_vm8 = vcmp.ne.f32.partialorder %v842_v12, %v842_v12 }
 0x297   :  { %v417_v18 = vmul.f32 1.442695, %v415_v14  ;;  %v459_v20 = vmul.f32 1.442695, %v457_v16  ;;  %v416_v21 = vsub.f32 0.0, %v414_v17  ;;  %v458_v22 = vsub.f32 0.0, %v456_v19 }
 0x298   :  { %vm452_vm9 = vcmp.ne.f32.partialorder %v844_v13, %v844_v13 }
 0x299   :  { %623 = vpow2.f32 %v417_v18  ;;  %v419_v23 = vmul.f32 1.442695, %v416_v21  ;;  %v461_v24 = vmul.f32 1.442695, %v458_v22 }
 0x29a   :  { %625 = vpow2.f32 %v459_v20 }
 0x29b   :  { %627 = vpow2.f32 %v419_v23 }
 0x29c   :  { %629 = vpow2.f32 %v461_v24 }
 0x2a3   :  { %v624_v25 = vpop.eup %623 }
 0x2a4   :  { %v626_v26 = vpop.eup %625  ;;  %v421_v27 = vadd.f32 1.0, %v624_v25  ;;  %v424_v33 = vmul.f32 -0.5, %v624_v25  ;;  %v427_v38 = vand.u32 2147483647, %v624_v25 }
 0x2a5   :  { %v463_v28 = vadd.f32 1.0, %v626_v26  ;;  %v628_v29 = vpop.eup %627  ;;  %v466_v34 = vmul.f32 -0.5, %v626_v26  ;;  %v469_v40 = vand.u32 2147483647, %v626_v26 }
 0x2a6   :  { %631 = vlog2.f32 %v421_v27  ;;  %v630_v30 = vpop.eup %629  ;;  %v430_v31 = vadd.f32 1.0, %v628_v29  ;;  %v433_v35 = vmul.f32 -0.5, %v628_v29  ;;  %v425_v36 = vadd.f32 1.0, %v424_v33 }
 0x2a7   :  { %633 = vlog2.f32 %v463_v28  ;;  %v472_v32 = vadd.f32 1.0, %v630_v30  ;;  %v475_v37 = vmul.f32 -0.5, %v630_v30  ;;  %v467_v39 = vadd.f32 1.0, %v466_v34 }
 0x2a8   :  { %635 = vlog2.f32 %v430_v31  ;;  %v434_v44 = vadd.f32 1.0, %v433_v35  ;;  %v426_v47 = vmul.f32 %v624_v25, %v425_v36  ;;  %v436_v48 = vand.u32 2147483647, %v628_v29 }
 0x2a9   :  { %637 = vlog2.f32 %v472_v32  ;;  %v476_v49 = vadd.f32 1.0, %v475_v37  ;;  %vm428_vm3 = vcmp.lt.f32.partialorder %v427_v38, 0.0004427343  ;;  %v468_v51 = vmul.f32 %v626_v26, %v467_v39 }
 0x2aa   :  { %v478_v52 = vand.u32 2147483647, %v630_v30  ;;  %vm470_vm5 = vcmp.lt.f32.partialorder %v469_v40, 0.0004427343  ;;  %v435_v60 = vmul.f32 %v628_v29, %v434_v44  ;;  %vm437_vm6 = vcmp.lt.f32.partialorder %v436_v48, 0.0004427343 }
 0x2ab   :  { %v477_v63 = vmul.f32 %v630_v30, %v476_v49 }
 0x2ac   :  { %vm479_vm7 = vcmp.lt.f32.partialorder %v478_v52, 0.0004427343 }
 0x2b0   :  { %v632_v41 = vpop.eup %631 }
 0x2b1   :  { %v634_v45 = vpop.eup %633  ;;  %v423_v46 = vmul.f32 0.6931472, %v632_v41 }
 0x2b2   :  { %v465_v50 = vmul.f32 0.6931472, %v634_v45  ;;  %v636_v53 = vpop.eup %635 }
 0x2b3   :  { %v429_v54 = vsel %vm428_vm3, %v426_v47, %v423_v46  ;;  %v638_v56 = vpop.eup %637  ;;  %v432_v59 = vmul.f32 0.6931472, %v636_v53 }
 0x2b4   :  { %v439_v57 = vadd.f32 %v429_v54, %v407_v42  ;;  %v471_v58 = vsel %vm470_vm5, %v468_v51, %v465_v50  ;;  %v474_v62 = vmul.f32 0.6931472, %v638_v56 }
 0x2b5   :  { %v481_v61 = vadd.f32 %v471_v58, %v449_v43  ;;  %v438_v3 = vsel %vm437_vm6, %v435_v60, %v432_v59 }
 0x2b6   :  { %v441_v0 = vsel %vm409_vm2, %v836_v1, %v439_v57  ;;  %v440_v7 = vadd.f32 %v438_v3, %v408_v55  ;;  %v480_v8 = vsel %vm479_vm7, %v477_v63, %v474_v62 }
 0x2b7   :  { %v443_v5 = vadd.f32 2.0, %v441_v0  ;;  %v483_v6 = vsel %vm451_vm4, %v838_v2, %v481_v61  ;;  %v482_v9 = vadd.f32 %v480_v8, %v450_v4 }
 0x2b8   :  { %485 = vst [vmem:[#allocation8 + $0x10] sm:$0xff] %v483_v6  ;;  %v442_v1 = vsel %vm410_vm8, %v842_v12, %v440_v7 }
 0x2b9   :  { %445 = vst [vmem:[#allocation8] sm:$0xff] %v443_v5  ;;  %v444_v10 = vadd.f32 2.0, %v442_v1  ;;  %v484_v11 = vsel %vm452_vm9, %v844_v13, %v482_v9 }
 0x2ba   :  { %486 = vst [vmem:[#allocation8 + $0x30] sm:$0xff] %v484_v11 }
 0x2bb   :  { %446 = vst [vmem:[#allocation8 + $0x20] sm:$0xff] %v444_v10 }
 0x2bc   :  { %716 = shalt.err (!%p713_p0)
}
 0x2bd   :  { %s717_s14 = scalar_lea.hbm %s887_s5, 1024 }
 0x2be   :  { %p718_p1 = scmp.ne.s32.totalorder %s887_s5, %s717_s14  ;;  %p721_p2 = scmp.lt.u32.totalorder %s717_s14, %s887_s5 }
 0x2c0   :  { %p723_p3 = pnand %p721_p2, %p718_p1 }
 0x2c2   :  { %726 = shalt.err (!%p723_p3)
}
 0x2c3   :  { %s746_s18 = smov 512   ;;  %s747_s19 = smov 32  }
 0x2c4   :  { %500 = dma.vmem_to_hbm [thread:$0]  %s495_s4, 1024, %s887_s5, [#allocation4], %s746_s18, %s746_s18, %s747_s19  }
 0x2c5   :  { %731 = dma.done.wait [#allocation4], 1024  }
 0x2c6   :  { %732 = vsyncadd [#allocation4], 4294966272 }
 0x2c7   :  { %504 = vsyncpa [#allocation3], 1 }
 0x2c8   :  { %505 = vsyncpa [#allocation6], 1 }
 0x2c9   :  { %506 = vsyncpa [#allocation4], 1 }

</bundles_post_ra>
